<compile_context>
chip_gen: v6e
topology: v6e:2x2x1
jax: 0.10.0
libtpu: 0.0.40
codegen_flags: <defaults>
</compile_context>

<pallas_src>
import jax
import jax.numpy as jnp
from jax.experimental import pallas as pl
from jax.experimental.pallas import tpu as pltpu


def cam_kernel(x_ref, xbarc_ref, xbarr_ref, wq_ref, bq_ref, wkt_ref, bk_ref,
               wvg_ref, bvg_ref, o_ref):
    # ---- tiny per-batch pooled path (O(C^2)); recomputed per spatial tile so
    # both grid axes can stay "parallel" -------------------------------------
    xbar_c = xbarc_ref[...]                                      # (C, 1) f32
    xbar_r = xbarr_ref[...]                                      # (1, C) f32

    # pool-before-conv: q_pool = Wq @ mean(x) + bq ; k_pool likewise
    q_col = jnp.dot(wq_ref[...], xbar_c,
                    preferred_element_type=jnp.float32) + bq_ref[...]   # (C, 1)
    k_row = jnp.dot(xbar_r, wkt_ref[...],
                    preferred_element_type=jnp.float32) + bk_ref[...]   # (1, C)

    # outer product on the VPU (broadcast mul), not a K=1 MXU contraction
    energy = q_col * k_row                                       # (C, C)

    # softmax over the *flattened* C*C block (torch softmax on view(B, -1))
    m = jnp.max(energy, keepdims=True)                           # (1, 1)
    e = jnp.exp(energy - m)
    attn = e / jnp.sum(e, keepdims=True)                         # (C, C)

    # fold attention into the (gamma-scaled) value projection
    mmat = jnp.dot(attn, wvg_ref[...],
                   preferred_element_type=jnp.float32)           # (C, C)
    cvec = jnp.dot(attn, bvg_ref[...],
                   preferred_element_type=jnp.float32)           # (C, 1)

    # ---- the single big matmul + residual on the (C, T) spatial tile -------
    xt = x_ref[...]                                              # (C, T), in dtype
    acc = jnp.dot(mmat.astype(xt.dtype), xt,
                  preferred_element_type=jnp.float32)            # (C, T) f32
    o_ref[...] = (acc + cvec + xt.astype(jnp.float32)).astype(o_ref.dtype)


def _pick_spatial_tile(hw, c, itemsize):
    """Largest lane-aligned tile that divides HW and keeps the double-buffered
    x+out blocks comfortably inside the scoped-VMEM default on all chips."""
    budget = 8 << 20                       # bytes for 2x(in)+2x(out) blocks
    for t in (2048, 1024, 512, 256, 128):
        if hw % t == 0 and 4 * c * t * itemsize <= budget:
            return t
    # Small or ragged spatial extent: fall back to a single full-width block
    # (legal because the block equals the full dim; stores become masked).
    return hw


def cam_forward(x, wq, bq, wk, bk, wv, bv, gamma):
    B, C, H, W = x.shape
    HW = H * W
    xf = x.reshape(B, C, HW)                         # keep input dtype (bf16 ok)

    # Per-batch channel mean of x (tiny (B, C)).  Pooling commutes with the
    # 1x1 convs, so q_pool / k_pool are derived from this inside the kernel.
    xbar = jnp.mean(xf.astype(jnp.float32), axis=-1)             # (B, C)
    xbar_col = xbar[:, :, None]                                  # (B, C, 1)
    xbar_row = xbar[:, None, :]                                  # (B, 1, C)

    # Fold gamma into the value projection:  gamma*(attn@(Wv x + bv))
    #   = (attn @ (gamma*Wv)) x + attn @ (gamma*bv)
    wq32 = wq.astype(jnp.float32)                                # (C, C)
    bq_col = bq.reshape(C, 1).astype(jnp.float32)                # (C, 1)
    wk_t = jnp.transpose(wk).astype(jnp.float32)                 # (C, C) = Wk^T
    bk_row = bk.reshape(1, C).astype(jnp.float32)                # (1, C)
    wv_g = (gamma * wv).astype(jnp.float32)                      # (C, C)
    bv_g = (gamma * bv).reshape(C, 1).astype(jnp.float32)        # (C, 1)

    T = _pick_spatial_tile(HW, C, xf.dtype.itemsize)
    n_t = HW // T

    shared_cc = pl.BlockSpec((C, C), lambda b, t: (0, 0))
    shared_c1 = pl.BlockSpec((C, 1), lambda b, t: (0, 0))
    shared_1c = pl.BlockSpec((1, C), lambda b, t: (0, 0))

    out = pl.pallas_call(
        cam_kernel,
        out_shape=jax.ShapeDtypeStruct((B, C, HW), xf.dtype),
        grid_spec=pltpu.PrefetchScalarGridSpec(
            num_scalar_prefetch=0,
            grid=(B, n_t),
            in_specs=[
                pl.BlockSpec((None, C, T), lambda b, t: (b, 0, t)),   # x tile
                pl.BlockSpec((None, C, 1), lambda b, t: (b, 0, 0)),   # xbar col
                pl.BlockSpec((None, 1, C), lambda b, t: (b, 0, 0)),   # xbar row
                shared_cc,                                            # Wq
                shared_c1,                                            # bq
                shared_cc,                                            # Wk^T
                shared_1c,                                            # bk (row)
                shared_cc,                                            # gamma*Wv
                shared_c1,                                            # gamma*bv
            ],
            out_specs=pl.BlockSpec((None, C, T), lambda b, t: (b, 0, t)),
        ),
        compiler_params=pltpu.CompilerParams(
            dimension_semantics=("parallel", "parallel")),
    )(xf, xbar_col, xbar_row, wq32, bq_col, wk_t, bk_row, wv_g, bv_g)
    return out.reshape(B, C, H, W)


def cam_reference(x, wq, bq, wk, bk, wv, bv, gamma):
    """Pure-JAX reference mirroring the PyTorch forward (unfused)."""
    B, C, H, W = x.shape
    xf = x.reshape(B, C, H * W).astype(jnp.float32)
    q = jnp.einsum('oc,bcp->bop', wq, xf) + bq[None, :, None]
    k = jnp.einsum('oc,bcp->bop', wk, xf) + bk[None, :, None]
    v = jnp.einsum('oc,bcp->bop', wv, xf) + bv[None, :, None]
    q_pool = q.mean(-1)                                          # (B, C)
    k_pool = k.mean(-1)                                          # (B, C)
    energy = q_pool[:, :, None] * k_pool[:, None, :]             # (B, C, C)
    attn = jax.nn.softmax(energy.reshape(B, C * C), axis=-1).reshape(B, C, C)
    out = jnp.einsum('bij,bjp->bip', attn, v).reshape(B, C, H, W)
    return gamma * out + x.astype(jnp.float32)


if __name__ == "__main__":
    B, C, H, W = 2, 4, 16, 16

    key = jax.random.PRNGKey(0)
    kx, kwq, kbq, kwk, kbk, kwv, kbv = jax.random.split(key, 7)

    x = jax.random.normal(kx, (B, C, H, W), dtype=jnp.float32)

    # Conv2d(in=C, out=C, k=1) weights are (C, C, 1, 1) in torch; a 1x1 conv
    # is a channel matmul, so we materialize them directly as (C, C).
    wq = 0.1 * jax.random.normal(kwq, (C, C), dtype=jnp.float32)
    bq = 0.1 * jax.random.normal(kbq, (C,), dtype=jnp.float32)
    wk = 0.1 * jax.random.normal(kwk, (C, C), dtype=jnp.float32)
    bk = 0.1 * jax.random.normal(kbk, (C,), dtype=jnp.float32)
    wv = 0.1 * jax.random.normal(kwv, (C, C), dtype=jnp.float32)
    bv = 0.1 * jax.random.normal(kbv, (C,), dtype=jnp.float32)
    # PyTorch inits gamma to 0 (output == x); use 0.5 so the attention path
    # is exercised.
    gamma = jnp.float32(0.5)

    out = cam_forward(x, wq, bq, wk, bk, wv, bv, gamma)
    out = jax.block_until_ready(out)

    ref = cam_reference(x, wq, bq, wk, bk, wv, bv, gamma)
    assert out.shape == (B, C, H, W)
    assert jnp.allclose(out, ref, rtol=1e-5, atol=2e-5), \
        f"max abs err {jnp.max(jnp.abs(out - ref))}"

    print("KERNEL_OK")
</pallas_src>

<mosaic_0001>
module attributes {stable_mosaic.version = 11 : i64} {
  func.func @cam_kernel(%arg0: i32, %arg1: i32, %arg2: memref<1x4x256xf32, #tpu.memory_space<vmem>>, %arg3: memref<1x4x1xf32, #tpu.memory_space<vmem>>, %arg4: memref<1x1x4xf32, #tpu.memory_space<vmem>>, %arg5: memref<4x4xf32, #tpu.memory_space<vmem>>, %arg6: memref<4x1xf32, #tpu.memory_space<vmem>>, %arg7: memref<4x4xf32, #tpu.memory_space<vmem>>, %arg8: memref<1x4xf32, #tpu.memory_space<vmem>>, %arg9: memref<4x4xf32, #tpu.memory_space<vmem>>, %arg10: memref<4x1xf32, #tpu.memory_space<vmem>>, %arg11: memref<1x4x256xf32, #tpu.memory_space<vmem>>) attributes {dimension_semantics = [#tpu.dimension_semantics<parallel>, #tpu.dimension_semantics<parallel>], iteration_bounds = array<i64: 2, 1>, scalar_prefetch = 0 : i64, scratch_operands = 0 : i64, tpu.core_type = #tpu.core_type<tc>, window_params = [{transform_indices = @transform_0, window_bounds = array<i64: 1, 4, 256>}, {transform_indices = @transform_1, window_bounds = array<i64: 1, 4, 1>}, {transform_indices = @transform_2, window_bounds = array<i64: 1, 1, 4>}, {pipeline_mode = #tpu.pipeline_mode<synchronous>, transform_indices = @transform_3, window_bounds = array<i64: 4, 4>}, {pipeline_mode = #tpu.pipeline_mode<synchronous>, transform_indices = @transform_4, window_bounds = array<i64: 4, 1>}, {pipeline_mode = #tpu.pipeline_mode<synchronous>, transform_indices = @transform_5, window_bounds = array<i64: 4, 4>}, {pipeline_mode = #tpu.pipeline_mode<synchronous>, transform_indices = @transform_6, window_bounds = array<i64: 1, 4>}, {pipeline_mode = #tpu.pipeline_mode<synchronous>, transform_indices = @transform_7, window_bounds = array<i64: 4, 4>}, {pipeline_mode = #tpu.pipeline_mode<synchronous>, transform_indices = @transform_8, window_bounds = array<i64: 4, 1>}, {transform_indices = @transform_9, window_bounds = array<i64: 1, 4, 256>}]} {
    %c0 = arith.constant 0 : index
    %c0_0 = arith.constant 0 : index
    %c0_1 = arith.constant 0 : index
    %0 = vector.load %arg3[%c0, %c0_0, %c0_1] : memref<1x4x1xf32, #tpu.memory_space<vmem>>, vector<1x4x1xf32>
    %1 = vector.shape_cast %0 : vector<1x4x1xf32> to vector<4x1xf32>
    %c0_2 = arith.constant 0 : index
    %c0_3 = arith.constant 0 : index
    %c0_4 = arith.constant 0 : index
    %2 = vector.load %arg4[%c0_2, %c0_3, %c0_4] : memref<1x1x4xf32, #tpu.memory_space<vmem>>, vector<1x1x4xf32>
    %3 = vector.shape_cast %2 : vector<1x1x4xf32> to vector<1x4xf32>
    %c0_5 = arith.constant 0 : index
    %c0_6 = arith.constant 0 : index
    %4 = vector.load %arg5[%c0_5, %c0_6] : memref<4x4xf32, #tpu.memory_space<vmem>>, vector<4x4xf32>
    %cst = arith.constant dense<0.000000e+00> : vector<4x1xf32>
    %5 = tpu.matmul %4, %1, %cst {dimension_numbers = #tpu.dot_dimension_numbers<[1], [0], [0], [1], [0, 0, 1, 1], [], []>} : vector<4x4xf32>, vector<4x1xf32>, vector<4x1xf32> -> vector<4x1xf32>
    %c0_7 = arith.constant 0 : index
    %c0_8 = arith.constant 0 : index
    %6 = vector.load %arg6[%c0_7, %c0_8] : memref<4x1xf32, #tpu.memory_space<vmem>>, vector<4x1xf32>
    %7 = arith.addf %5, %6 : vector<4x1xf32>
    %c0_9 = arith.constant 0 : index
    %c0_10 = arith.constant 0 : index
    %8 = vector.load %arg7[%c0_9, %c0_10] : memref<4x4xf32, #tpu.memory_space<vmem>>, vector<4x4xf32>
    %cst_11 = arith.constant dense<0.000000e+00> : vector<1x4xf32>
    %9 = tpu.matmul %3, %8, %cst_11 {dimension_numbers = #tpu.dot_dimension_numbers<[1], [0], [0], [1], [0, 0, 1, 1], [], []>} : vector<1x4xf32>, vector<4x4xf32>, vector<1x4xf32> -> vector<1x4xf32>
    %c0_12 = arith.constant 0 : index
    %c0_13 = arith.constant 0 : index
    %10 = vector.load %arg8[%c0_12, %c0_13] : memref<1x4xf32, #tpu.memory_space<vmem>>, vector<1x4xf32>
    %11 = arith.addf %9, %10 : vector<1x4xf32>
    %12 = vector.broadcast %7 : vector<4x1xf32> to vector<4x4xf32>
    %13 = vector.broadcast %11 : vector<1x4xf32> to vector<4x4xf32>
    %14 = arith.mulf %12, %13 : vector<4x4xf32>
    %15 = vector.shape_cast %14 : vector<4x4xf32> to vector<1x4x4xf32>
    %cst_14 = arith.constant dense<0xFF800000> : vector<1xf32>
    %16 = vector.multi_reduction <maximumf>, %15, %cst_14 [1, 2] : vector<1x4x4xf32> to vector<1xf32>
    %17 = vector.shape_cast %16 : vector<1xf32> to vector<1x1x1xf32>
    %18 = vector.extract %17[0, 0, 0] : f32 from vector<1x1x1xf32>
    %19 = vector.broadcast %18 : f32 to vector<1x1xf32>
    %20 = vector.broadcast %19 : vector<1x1xf32> to vector<4x4xf32>
    %21 = arith.subf %14, %20 : vector<4x4xf32>
    %22 = math.exp %21 : vector<4x4xf32>
    %23 = vector.shape_cast %22 : vector<4x4xf32> to vector<1x4x4xf32>
    %cst_15 = arith.constant dense<0.000000e+00> : vector<1xf32>
    %24 = vector.multi_reduction <add>, %23, %cst_15 [1, 2] : vector<1x4x4xf32> to vector<1xf32>
    %25 = vector.shape_cast %24 : vector<1xf32> to vector<1x1x1xf32>
    %26 = vector.extract %25[0, 0, 0] : f32 from vector<1x1x1xf32>
    %27 = vector.broadcast %26 : f32 to vector<1x1xf32>
    %28 = vector.broadcast %27 : vector<1x1xf32> to vector<4x4xf32>
    %29 = arith.divf %22, %28 : vector<4x4xf32>
    %c0_16 = arith.constant 0 : index
    %c0_17 = arith.constant 0 : index
    %30 = vector.load %arg9[%c0_16, %c0_17] : memref<4x4xf32, #tpu.memory_space<vmem>>, vector<4x4xf32>
    %cst_18 = arith.constant dense<0.000000e+00> : vector<4x4xf32>
    %31 = tpu.matmul %29, %30, %cst_18 {dimension_numbers = #tpu.dot_dimension_numbers<[1], [0], [0], [1], [0, 0, 1, 1], [], []>} : vector<4x4xf32>, vector<4x4xf32>, vector<4x4xf32> -> vector<4x4xf32>
    %c0_19 = arith.constant 0 : index
    %c0_20 = arith.constant 0 : index
    %32 = vector.load %arg10[%c0_19, %c0_20] : memref<4x1xf32, #tpu.memory_space<vmem>>, vector<4x1xf32>
    %cst_21 = arith.constant dense<0.000000e+00> : vector<4x1xf32>
    %33 = tpu.matmul %29, %32, %cst_21 {dimension_numbers = #tpu.dot_dimension_numbers<[1], [0], [0], [1], [0, 0, 1, 1], [], []>} : vector<4x4xf32>, vector<4x1xf32>, vector<4x1xf32> -> vector<4x1xf32>
    %c0_22 = arith.constant 0 : index
    %c0_23 = arith.constant 0 : index
    %c0_24 = arith.constant 0 : index
    %34 = vector.load %arg2[%c0_22, %c0_23, %c0_24] : memref<1x4x256xf32, #tpu.memory_space<vmem>>, vector<1x4x256xf32>
    %35 = vector.shape_cast %34 : vector<1x4x256xf32> to vector<4x256xf32>
    %cst_25 = arith.constant dense<0.000000e+00> : vector<4x256xf32>
    %36 = tpu.matmul %31, %35, %cst_25 {dimension_numbers = #tpu.dot_dimension_numbers<[1], [0], [0], [1], [0, 0, 1, 1], [], []>} : vector<4x4xf32>, vector<4x256xf32>, vector<4x256xf32> -> vector<4x256xf32>
    %37 = vector.broadcast %33 : vector<4x1xf32> to vector<4x256xf32>
    %38 = arith.addf %36, %37 : vector<4x256xf32>
    %39 = arith.addf %38, %35 : vector<4x256xf32>
    %c0_26 = arith.constant 0 : index
    %c0_27 = arith.constant 0 : index
    %c0_28 = arith.constant 0 : index
    %40 = vector.load %arg11[%c0_26, %c0_27, %c0_28] : memref<1x4x256xf32, #tpu.memory_space<vmem>>, vector<1x4x256xf32>
    %41 = vector.shape_cast %40 : vector<1x4x256xf32> to vector<4x256xf32>
    %42 = vector.shape_cast %39 : vector<4x256xf32> to vector<1x4x256xf32>
    tpu.vector_store %arg11[%c0_26, %c0_27, %c0_28], %42 {strides = array<i32>} : memref<1x4x256xf32, #tpu.memory_space<vmem>>, vector<1x4x256xf32>,
    return
  }
  func.func @transform_0(%arg0: i32, %arg1: i32) -> (i32, i32, i32) {
    %c0_i32 = arith.constant 0 : i32
    %c0_i32_0 = arith.constant 0 : i32
    return %arg0, %c0_i32, %arg1 : i32, i32, i32
  }
  func.func @transform_1(%arg0: i32, %arg1: i32) -> (i32, i32, i32) {
    %c0_i32 = arith.constant 0 : i32
    %c0_i32_0 = arith.constant 0 : i32
    %c0_i32_1 = arith.constant 0 : i32
    return %arg0, %c0_i32, %c0_i32_0 : i32, i32, i32
  }
  func.func @transform_2(%arg0: i32, %arg1: i32) -> (i32, i32, i32) {
    %c0_i32 = arith.constant 0 : i32
    %c0_i32_0 = arith.constant 0 : i32
    %c0_i32_1 = arith.constant 0 : i32
    return %arg0, %c0_i32, %c0_i32_0 : i32, i32, i32
  }
  func.func @transform_3(%arg0: i32, %arg1: i32) -> (i32, i32) {
    %c0_i32 = arith.constant 0 : i32
    %c0_i32_0 = arith.constant 0 : i32
    %c0_i32_1 = arith.constant 0 : i32
    return %c0_i32, %c0_i32_0 : i32, i32
  }
  func.func @transform_4(%arg0: i32, %arg1: i32) -> (i32, i32) {
    %c0_i32 = arith.constant 0 : i32
    %c0_i32_0 = arith.constant 0 : i32
    %c0_i32_1 = arith.constant 0 : i32
    return %c0_i32, %c0_i32_0 : i32, i32
  }
  func.func @transform_5(%arg0: i32, %arg1: i32) -> (i32, i32) {
    %c0_i32 = arith.constant 0 : i32
    %c0_i32_0 = arith.constant 0 : i32
    %c0_i32_1 = arith.constant 0 : i32
    return %c0_i32, %c0_i32_0 : i32, i32
  }
  func.func @transform_6(%arg0: i32, %arg1: i32) -> (i32, i32) {
    %c0_i32 = arith.constant 0 : i32
    %c0_i32_0 = arith.constant 0 : i32
    %c0_i32_1 = arith.constant 0 : i32
    return %c0_i32, %c0_i32_0 : i32, i32
  }
  func.func @transform_7(%arg0: i32, %arg1: i32) -> (i32, i32) {
    %c0_i32 = arith.constant 0 : i32
    %c0_i32_0 = arith.constant 0 : i32
    %c0_i32_1 = arith.constant 0 : i32
    return %c0_i32, %c0_i32_0 : i32, i32
  }
  func.func @transform_8(%arg0: i32, %arg1: i32) -> (i32, i32) {
    %c0_i32 = arith.constant 0 : i32
    %c0_i32_0 = arith.constant 0 : i32
    %c0_i32_1 = arith.constant 0 : i32
    return %c0_i32, %c0_i32_0 : i32, i32
  }
  func.func @transform_9(%arg0: i32, %arg1: i32) -> (i32, i32, i32) {
    %c0_i32 = arith.constant 0 : i32
    %c0_i32_0 = arith.constant 0 : i32
    return %arg0, %c0_i32, %arg1 : i32, i32, i32
  }
}

</mosaic_0001>

<bundles_post_ra>
// kernel: tpu_custom_call.1
= control target key start
LH: loop header
LB: loop body
LE: loop exit
PB: predicated region body
PF: predicated region fallthrough
CT: control target
= control target key end

     0   :  { %s1560_s0 = inlined_call_operand.vmem [shape: f32[2,4,256], index: 0, kind: input, shape index: {}]   ;;  %s1561_s1 = inlined_call_operand.vmem [shape: f32[2,4,1], index: 1, kind: input, shape index: {}]   ;;  %s1562_s2 = inlined_call_operand.hbm [shape: f32[2,1,4], index: 2, kind: input, shape index: {}]   ;;  %s1563_s3 = inlined_call_operand.vmem [shape: f32[4,4], index: 3, kind: input, shape index: {}]   ;;  %s1564_s4 = inlined_call_operand.vmem [shape: f32[4,1], index: 4, kind: input, shape index: {}]   ;;  %s1565_s5 = inlined_call_operand.vmem [shape: f32[4,4], index: 5, kind: input, shape index: {}]   ;;  %s1566_s6 = inlined_call_operand.hbm [shape: f32[1,4], index: 6, kind: input, shape index: {}]   ;;  %s1567_s7 = inlined_call_operand.vmem [shape: f32[4,4], index: 7, kind: input, shape index: {}]   ;;  %s1568_s8 = inlined_call_operand.vmem [shape: f32[4,1], index: 8, kind: input, shape index: {}]   ;;  %s1569_s9 = inlined_call_operand.hbm [shape: f32[2,4,256], index: 9, kind: output, shape index: {}]  }
   0x1   :  { %1574 = sst [smem:[#allocation14_spill]] %s1566_s6 }
   0x2   :  { %14 = vsyncpa [#allocation3], 0 }
   0x3   :  { %16 = vsyncpa [#allocation3 + $0x1], 0 }
   0x4   :  { %17 = vsyncpa [#allocation6], 0 }
   0x5   :  { %18 = vsyncpa [#allocation4], 0 }
   0x6   :  { %20 = vsyncpa [#allocation4 + $0x1], 0  ;;  %s1345_s30 = smov 0   ;;  %s1347_s10 = smov 0  }
   0x7   :  { %s1349_s11 = smov 0   ;;  %s1351_s12 = smov 0  }
   0x8   :  { %s1353_s13 = smov 0   ;;  %s1355_s14 = smov 0  }
   0x9 LB: > { %1575 = sst [smem:[#allocation11_spill]] %s1283_s13  ;;  %s1004_s15 = sadd.s32 4294967295, %s1287_s14   ;;  %s1287_s14 = sphi %s1355_s14, %s26_s14   ;;  %s1283_s13 = sphi %s1353_s13, %s1592_s13   ;;  %s1279_s12 = sphi %s1351_s12, %s1591_s12   ;;  %s1275_s11 = sphi %s1349_s11, %s1595_s11   ;;  %s1271_s10 = sphi %s1347_s10, %s1594_s10   ;;  %s1267_s30 = sphi %s1345_s30, %s1593_s30  }
   0xa   : > { %s1005_s16 = sadd.s32 4294967294, %s1287_s14   ;;  %p112_p0 = scmp.ne.s32.totalorder %s1271_s10, %s1267_s30 }
   0xb   : > { %p1379_p1 = scmp.eq.s32.totalorder %s1004_s15, 0  ;;  %p1383_p2 = scmp.eq.s32.totalorder %s1004_s15, 1 }
   0xc   : > { %p270_p3 = scmp.eq.s32.totalorder %s1005_s16, 1  ;;  %p1006_p5 = scmp.ge.s32.totalorder %s1287_s14, 1 }
   0xd   : > { %p1389_p4 = por %p1379_p1, %p112_p0  ;;  %p277_p7 = scmp.lt.s32.totalorder %s1287_s14, 3 }
   0xe   : > { %p1394_p6 = por %p270_p3, %p112_p0  ;;  %s1289_s22 = smov [#allocation5]  }
   0xf   : > { %s1578_s19 = scalar_select %p1389_p4, 1, 0 }
  0x10   : > { %s1579_s20 = scalar_select %p1394_p6, 1, 0 }
  0x11   : > { %p1399_p8 = pnand %p1006_p5, %p277_p7  ;;  %s299_s23 = sshll.u32 %s1289_s22, 4  ;;  %s300_s23 = int_to_ptr.vmem [resolvable:$true] %s299_s23 }
  0x12   : > { %1580 = sst [smem:[#allocation12_spill]] %s1579_s20  ;;  %s38_s25 = sadd.s32 1, %s1283_s13 }
  0x13   : > { %p1074_p10 = pneg %p1399_p8  ;;  %s99_s26 = sadd.s32 1, %s1275_s11 }
  0x14   : > { %p40_p12 = scmp.ge.s32.totalorder %s38_s25, 2  ;;  %s1160_s27 = scalar_lea.vmem %s300_s23, 16 }
  0x15   : > { %p1408_p11 = pnand %p1074_p10, %p1379_p1  ;;  %p1161_p0 = scmp.ne.s32.totalorder %s300_s23, %s1160_s27 }
  0x16   : > { %s1167_s28 = scalar_lea.vmem %s300_s23, 32  ;;  %p1168_p7 = scmp.lt.s32.totalorder %s300_s23, %s300_s23 }
  0x17   : > { %p1151_p13 = pneg %p1408_p11  ;;  %p1169_p9 = scmp.lt.s32.totalorder %s1167_s28, %s1160_s27 }
  0x19   : > { %p1163_p3 = pnand %p1161_p0, %p1151_p13  ;;  %p1170_p6 = por %p1169_p9, %p1168_p7 }
  0x1b   : > { %p1164_p5 = pneg %p1163_p3 }
  0x1d   : > { %p1171_p4 = pnand %p1170_p6, %p1164_p5 }
  0x1f   : > { %1174 = shalt.err (!%p1171_p4)
}
  0x20   : > { %s1583_s6 = sld [smem:[#allocation14_spill]]  ;;  %s1597_s25 = smov (%p40_p12, %s38_s25), 0 }
  0x21   : > { %1584 = sst [smem:[#allocation13_spill]] %s1597_s25  ;;  %p106_p6 = scmp.ne.s32.totalorder %s1275_s11, %s1271_s10 }
  0x22   : > { %p107_p4 = scmp.eq.s32.totalorder %s1287_s14, 0  ;;  %s96_s16 = ssub.s32 %s1283_s13, %s1597_s25 }
  0x23   : > { %p1087_p9 = scmp.lt.s32.totalorder %s1287_s14, 2  ;;  %p97_p10 = scmp.eq.s32.totalorder %s96_s16, 0 }
  0x24   : > { %p108_p13 = por %p107_p4, %p106_p6  ;;  %p1431_p0 = por %p1383_p2, %p106_p6 }
  0x25   : > { %s336_s24 = sand.u32 1, %s1275_s11   ;;  %s1009_s28 = sshll.u32 %s1283_s13, 4 }
  0x26   : > { %1077 = dma.hbm_to_vmem [thread:$0]  (!%p1408_p11), %s1583_s6, 16, %s300_s23, [#allocation6]  }
  0x27   : > { %s1437_s27 = scalar_select %p97_p10, %s1275_s11, %s99_s26  }
  0x28   : > { %s339_s29 = scalar_lea.vmem [#allocation2], %s336_s24  ;;  %s344_s20 = scalar_lea.hbm %s1562_s2, %s1009_s28 }
  0x29   : > { %s346_s23 = sshll.u32 %s339_s29, 4  ;;  %p1443_p11 = pnand %p1087_p9, %p108_p13  ;;  %s347_s23 = int_to_ptr.vmem [resolvable:$true] %s346_s23 }
  0x2a   : > { %s337_s18 = scalar_lea.sflag [#allocation3], %s336_s24  ;;  %s1188_s16 = scalar_lea.vmem %s347_s23, 16 }
  0x2b   : > { %p1177_p2 = pneg %p1443_p11  ;;  %p1189_p12 = scmp.ne.s32.totalorder %s347_s23, %s1188_s16 }
  0x2c   : > { %s1290_s26 = smov [#allocation2]  }
  0x2d   : > { %p1191_p3 = pnand %p1189_p12, %p1177_p2  ;;  %s1193_s13 = sshll.u32 %s1290_s26, 4  ;;  %s1194_s13 = int_to_ptr.vmem [resolvable:$false] %s1193_s13 }
  0x2e   : > { %s1195_s29 = scalar_lea.vmem %s1194_s13, 32  ;;  %p1196_p7 = scmp.lt.s32.totalorder %s347_s23, %s1194_s13 }
  0x2f   : > { %p1192_p5 = pneg %p1191_p3  ;;  %p1197_p6 = scmp.lt.s32.totalorder %s1195_s29, %s1188_s16 }
  0x31   : > { %p1198_p4 = por %p1197_p6, %p1196_p7 }
  0x33   : > { %p1199_p10 = pnand %p1198_p4, %p1192_p5 }
  0x35   : > { %1202 = shalt.err (!%p1199_p10)
}
  0x36   : > { %1081 = dma.hbm_to_vmem [thread:$0]  (!%p1443_p11), %s344_s20, 16, %s347_s23, %s337_s18  }
  0x37   : > { %355 = sbr.rel (%p1399_p8) target bundleno = 1237 (0x4d5), region = 56  ;;  %s1454_s6 = sand.u32 (!%p1399_p8), 1, %s1271_s10  }
  0x38   : > { %s358_s24 = scalar_lea.sflag (!%p1399_p8), [#allocation3], %s1454_s6  ;;  %s360_s28 = scalar_lea.vmem (!%p1399_p8), [#allocation2], %s1454_s6 }
  0x39   : > { %p1587_p9 = scmp.ne.s32.totalorder (!%p1399_p8), %s1578_s19, 0 }
  0x3c   : > { %1254 = dma.done.wait (%p1587_p9), %s358_s24, 16  }
  0x3d   : > { %1256 = vsyncadd (%p1587_p9), %s358_s24, 4294967280 }
  0x3e   : > { %1258 = dma.done.wait (%p1379_p1), [#allocation6], 16  }
  0x3f   : > { %1260 = vsyncadd (%p1379_p1), [#allocation6], 4294967280  ;;  %p412_p8 = scmp.lt.s32.totalorder %s1279_s12, 1  ;;  %v1291_v0 = vmov 0.0   ;;  %vm1292_vm0 = vmmov 0   ;;  %vm434_vm1 = vcmask 1043456   ;;  %v591_v12 = vlaneseq }
  0x40   : > { %1042 = vmatprep.subr.mxu0 %v1291_v0  ;;  %1044 = vmatprep.mubr.msk.f32.mxu0 %vm1292_vm0, %v1291_v0  ;;  %vm430_vm2 = vcmask 31744   ;;  %v428_v2 = vld [vmem:[%s1563_s3] sm:$0xf]  ;;  %v1293_v5 = vmov 0   ;;  %vm596_vm3 = vcmask 27648   ;;  %s1033_s18 = sshll.u32 %s1279_s12, 7 }
  0x41   : > { %s1471_s13 = scalar_select %p412_p8, %s1279_s12, 1  ;;  %1047 = vmatprep.subr.mxu1 %v1291_v0  ;;  %1049 = vmatprep.mubr.msk.f32.mxu1 %vm1292_vm0, %v1291_v0  ;;  %v508_v3 = vld [vmem:[%s1565_s5] sm:$0xf]  ;;  %v592_v13 = vshrl.u32 %v591_v12, 7 }
  0x42   : > { %v427_v4 = vld [vmem:[%s360_s28] sm:$0x1]  ;;  %1048 = vmatpush3.msk.msra.mxu1 %vm434_vm1, %v508_v3  ;;  %1142 = vset.pattern.permute.xlu0 %v1293_v5  ;;  %v509_v14 = vld [vmem:[#allocation5] sm:$0x1]  ;;  %s884_s28 = scalar_lea.hbm %s1569_s9, %s1033_s18 }
  0x43   : > { %s1015_s17 = sshll.u32 %s1471_s13, 2  ;;  %1050 = vmatmul.mubr.msk.f32.vlgmr.msra.gmra.mxu1 %vm430_vm2, %v427_v4  ;;  %1057 = vmatprep.subr.mxu1 %v1291_v0  ;;  %v429_v6 = vld [vmem:[%s1564_s4] sm:$0xf]  ;;  %v593_v16 = vsub.s32 0, %v592_v13  ;;  %s1032_s20 = sshll.u32 %s1471_s13, 3 }
  0x44   : > { %s424_s21 = scalar_lea.vmem %s1561_s1, %s1015_s17  ;;  %1059 = vmatprep.mubr.msk.f32.mxu1 %vm1292_vm0, %v1291_v0  ;;  %1143 = vset.pattern.permute.xlu1 %v1293_v5  ;;  %v624_v33 = vld [vmem:[%s1567_s7] sm:$0xf]  ;;  %s419_s23 = scalar_lea.vmem %s1560_s0, %s1032_s20 }
  0x45   : > { %v426_v1 = vld [vmem:[%s424_s21] sm:$0xf]  ;;  %s1012_s13 = sshll.u32 %s1454_s6, 3  ;;  %s870_s17 = scalar_lea.sflag [#allocation4], %s1454_s6 }
  0x46   : > { %1043 = vmatpush3.msk.msra.mxu0 %vm434_vm1, %v426_v1  ;;  %v701_v34 = vld [vmem:[%s1568_s8] sm:$0xf]  ;;  %s410_s16 = scalar_lea.vmem [#allocation7], %s1012_s13  ;;  %s1294_s20 = smov [#allocation7]  }
  0x47   : > { %1045 = vmatmul.mubr.msk.f32.vlgmr.msra.gmra.mxu0 %vm430_vm2, %v428_v2  ;;  %1052 = vmatprep.subr.mxu0 %v1291_v0  ;;  %v775_v35 = vld [vmem:[%s419_s23] sm:$0xff]  ;;  %s886_s26 = sshll.u32 %s410_s16, 4  ;;  %s1207_s21 = sshll.u32 %s1294_s20, 4  ;;  %s887_s26 = int_to_ptr.vmem [resolvable:$true] %s886_s26  ;;  %s1208_s21 = int_to_ptr.vmem [resolvable:$false] %s1207_s21 }
  0x48   : > { %1054 = vmatprep.mubr.msk.f32.mxu0 %vm1292_vm0, %v1291_v0  ;;  %1053 = vmatpush3.msk.msra.mxu0 %vm434_vm1, %v624_v33  ;;  %v782_v36 = vcombine.high %v775_v35, %v775_v35  ;;  %s1203_s19 = scalar_lea.vmem %s887_s26, 128  ;;  %s1209_s12 = scalar_lea.vmem %s1208_s21, 256 }
  0x49   : > { %1058 = vmatpush3.msk.msra.mxu1 %vm434_vm1, %v701_v34  ;;  %p1204_p1 = scmp.ne.s32.totalorder %s887_s26, %s1203_s19  ;;  %p1210_p2 = scmp.lt.s32.totalorder %s887_s26, %s1208_s21 }
  0x4a   : > { %1024 = vmatprep.subr.msk.mxu0 %vm434_vm1, %v782_v36  ;;  %p1211_p12 = scmp.lt.s32.totalorder %s1209_s12, %s1203_s19 }
  0x4b   : > { %p1205_p13 = pnand %p1204_p1, %p1431_p0 }
  0x4c   : > { %p1212_p3 = por %p1211_p12, %p1210_p2 }
  0x4d   : > { %p1206_p11 = pneg %p1205_p13 }
  0x4f   : > { %p1213_p5 = pnand %p1212_p3, %p1206_p11 }
 0x103   : > { %v582_v9 = vpop.f32.mrf.mxu1 }
 0x104   : > { %v583_v15 = vadd.f32 %v582_v9, %v509_v14 }
 0x105   : > { %v1051_v11 = vpop.f32.mrf.mxu1 }
 0x106   : > { %v594_v17 = vrot.slane %v583_v15, %v593_v16 }
 0x107   : > { %v504_v7 = vpop.f32.mrf.mxu0 }
 0x108   : > { %v505_v8 = vadd.f32 %v504_v7, %v429_v6 }
 0x109   : > { %v1046_v10 = vpop.f32.mrf.mxu0 }
 0x10a   : > { %588 = vperm.xlu0 %1142, %v505_v8  }
 0x185   : > { %v589_v18 = vpop.permute.xlu0 %588 }
 0x186   : > { %v595_v19 = vmul.f32 %v594_v17, %v589_v18 }
 0x188   : > { %v597_v20 = vsel %vm596_vm3, %v595_v19, -inf }
 0x189   : > { %598 = vmax.xlane.f32.xlu0 %v597_v20 }
 0x212   : > { %v599_v21 = vpop.xlane.xlu0 %598 }
 0x213   : > { %v600_v22 = vrot.slane %v599_v21, 4 }
 0x215   : > { %v601_v23 = vmax.f32 %v599_v21, %v600_v22 }
 0x217   : > { %v602_v24 = vrot.slane %v601_v23, 2 }
 0x219   : > { %v603_v25 = vmax.f32 %v601_v23, %v602_v24 }
 0x21b   : > { %v604_v26 = vrot.slane %v603_v25, 1 }
 0x21d   : > { %v605_v27 = vmax.f32 %v603_v25, %v604_v26 }
 0x21f   : > { %1062 = vpush %v605_v27 }
 0x250   : > { %s1063_s29 = spop %1062 }
 0x251   : > { %v607_v28 = vstv %s1063_s29 }
 0x252   : > { %v608_v29 = vsub.f32 %v595_v19, %v607_v28 }
 0x254   : > { %v609_v30 = vmul.f32 1.442695, %v608_v29 }
 0x256   : > { %1145 = vpow2.f32 %v609_v30 }
 0x263   : > { %v1146_v31 = vpop.eup %1145 }
 0x264   : > { %v611_v32 = vsel %vm596_vm3, %v1146_v31, 0.0 }
 0x265   : > { %612 = vadd.xlane.f32.xlu1 %v611_v32 }
 0x2ee   : > { %v613_v37 = vpop.xlane.xlu1 %612 }
 0x2ef   : > { %v614_v38 = vrot.slane %v613_v37, 4 }
 0x2f1   : > { %v615_v39 = vadd.f32 %v614_v38, %v613_v37 }
 0x2f3   : > { %v616_v40 = vrot.slane %v615_v39, 2 }
 0x2f5   : > { %v617_v41 = vadd.f32 %v616_v40, %v615_v39 }
 0x2f7   : > { %v618_v42 = vrot.slane %v617_v41, 1 }
 0x2f9   : > { %v619_v43 = vadd.f32 %v618_v42, %v617_v41 }
 0x2fb   : > { %1064 = vpush %v619_v43 }
 0x32c   : > { %s1065_s15 = spop %1064 }
 0x32d   : > { %v621_v44 = vstv %s1065_s15 }
 0x32e   : > { %1147 = vrcp.f32 %v621_v44 }
 0x33b   : > { %v1148_v45 = vpop.eup %1147 }
 0x33c   : > { %v623_v46 = vmul.f32 %v1148_v45, %v1146_v31 }
 0x33e   : > { %1055 = vmatmul.mubr.msk.f32.vlgmr.msra.gmra.mxu0 %vm430_vm2, %v623_v46  ;;  %1060 = vmatmul.mubr.msk.f32.vlgmr.msra.gmra.mxu1 %vm430_vm2, %v623_v46 }
 0x33f   : > { %1025 = vmatpush1.msk.msra.mxu0 %vm434_vm1, %v775_v35  ;;  %854 = vmatprep.mubr.f32.mxu0 %v1291_v0 }
 0x3fe   : > { %v697_v47 = vpop.f32.mrf.mxu0  ;;  %v771_v48 = vpop.f32.mrf.mxu1 }
 0x3ff   : > { %778 = vperm.xlu1 %1143, %v771_v48   ;;  %1026 = vmatmul.mubr.msk.f32.vlgmr.msra.gmra.mxu0 %vm430_vm2, %v697_v47 }
 0x400   : > { %v1056_v49 = vpop.f32.mrf.mxu0  ;;  %v1061_v50 = vpop.f32.mrf.mxu1 }
 0x47a   : > { %v779_v51 = vpop.permute.xlu1 %778 }
 0x4bf   : > { %v856_v52 = vpop.f32.mrf.mxu0 }
 0x4c0   : > { %v857_v53 = vadd.f32 %v856_v52, %v779_v51 }
 0x4c1   : > { %v858_v54 = vpop.f32.mrf.mxu0 }
 0x4c2   : > { %v859_v55 = vadd.f32 %v858_v54, %v779_v51  ;;  %v862_v56 = vadd.f32 %v857_v53, %v775_v35 }
 0x4c4   : > { %v863_v57 = vadd.f32 %v859_v55, %v782_v36 }
 0x4c6   : > { %v866_v58 = vcombine.low %v862_v56, %v863_v57 }
 0x4c8   : > { %868 = vst [vmem:[%s410_s16] sm:$0xff] %v866_v58 }
 0x4c9   : > { %1216 = shalt.err (!%p1213_p5)
}
 0x4ca   : > { %s1217_s25 = scalar_lea.hbm %s884_s28, 128  ;;  %s1221_s15 = scalar_lea.hbm %s1569_s9, 256 }
 0x4cb   : > { %p1218_p7 = scmp.ne.s32.totalorder %s884_s28, %s1217_s25  ;;  %p1222_p10 = scmp.lt.s32.totalorder %s884_s28, %s1569_s9 }
 0x4cc   : > { %p1223_p9 = scmp.lt.s32.totalorder %s1221_s15, %s1217_s25 }
 0x4cd   : > { %p1219_p6 = pnand %p1218_p7, %p1431_p0 }
 0x4ce   : > { %p1224_p8 = por %p1223_p9, %p1222_p10 }
 0x4cf   : > { %p1220_p4 = pneg %p1219_p6 }
 0x4d1   : > { %p1225_p1 = pnand %p1224_p8, %p1220_p4 }
 0x4d3   : > { %1228 = shalt.err (!%p1225_p1)
}
 0x4d4   : > { %1072 = dma.vmem_to_hbm [thread:$0]  (%p1431_p0), %s887_s26, 128, %s884_s28, %s870_s17  }
 0x4d5 PF: > { %s1588_s16 = sld [smem:[#allocation12_spill]]  ;;  %s898_s29 = sand.u32 1, %s1267_s30  }
 0x4d6   : > { %p1590_p11 = scmp.ge.s32.totalorder %s1287_s14, 2  ;;  %s899_s24 = scalar_lea.sflag [#allocation4], %s898_s29 }
 0x4db   : > { %p1589_p13 = scmp.ne.s32.totalorder %s1588_s16, 0 }
 0x4dd   : > { %p1083_p2 = pnand %p1590_p11, %p1589_p13 }
 0x4df   : > { %p1084_p12 = pneg %p1083_p2 }
 0x4e1   : > { %1262 = dma.done.wait (%p1084_p12), %s899_s24, 128  }
 0x4e2   : > { %1264 = vsyncadd (%p1084_p12), %s899_s24, 4294967168  ;;  %s26_s14 = sadd.s32 1, %s1287_s14   ;;  %s1591_s12 = sld [smem:[#allocation11_spill]] }
 0x4e3   : > { %p23_p3 = scmp.ge.s32.totalorder %s26_s14, 4   ;;  %s1592_s13 = sld [smem:[#allocation13_spill]] }
 0x4e4   : > { %s1593_s30 = smov %s1271_s10  ;;  %s1594_s10 = smov %s1275_s11 }
 0x4e5   : > { %s1595_s11 = smov %s1437_s27  ;;  %25 = sbr.rel (!%p23_p3) target bundleno = 9 (0x9), region = 111 }
 0x4ea   :  { %904 = vsyncpa [#allocation3], 1 }
 0x4eb   :  { %906 = vsyncpa [#allocation3 + $0x1], 1 }
 0x4ec   :  { %907 = vsyncpa [#allocation6], 1 }
 0x4ed   :  { %908 = vsyncpa [#allocation4], 1 }
 0x4ee   :  { %910 = vsyncpa [#allocation4 + $0x1], 1 }

</bundles_post_ra>
